<compile_context>
chip_gen: v7x
topology: tpu7x:2x2x1
jax: 0.10.0
libtpu: 0.0.40
codegen_flags: <defaults>
</compile_context>

<pallas_src>
import functools

import jax
import jax.numpy as jnp
from jax.experimental import pallas as pl
from jax.experimental.pallas import tpu as pltpu


def _level_offsets(d, m):
    offs, off = [], 0
    for k in range(1, m + 1):
        offs.append(off)
        off += d ** k
    return offs, off


def _sigjoin_kernel(x_ref, y_ref, o_ref, *, d, m):
    """x_ref: (tb, L), y_ref: (tb, d), o_ref: (tb, L) — row-major HBM blocks.

    The blocks are transposed in VMEM so the batch sits on the lane axis for
    the Chen-identity computation (full-width VPU math; outer products are
    sublane repeat/tile on the XLU), then transposed back for one full-tile
    store.
    """
    offs, _ = _level_offsets(d, m)
    xt = x_ref[...].T                              # (L, tb)  batch on lanes
    y = y_ref[...].T                               # (d, tb)

    # z[k] = y^{⊗k} / k! as (d^k, tb).  z[0] = 1 is handled analytically
    # below (the j=0 / j=k boundary terms of the Chen sum).
    z = [None, y]
    outs = []
    for k in range(1, m + 1):
        ty = None
        if k >= 2:
            # tile(y, d^{k-1}) is shared by the z_k construction and the
            # j = k-1 Chen term below — compute once (manual CSE).
            ty = jnp.tile(y, (d ** (k - 1), 1))
            z.append(jnp.repeat(z[k - 1], d, axis=0) * ty * (1.0 / float(k)))
        # Chen's identity: out_k = x_k + z_k + Σ_{j=1..k-1} x_j ⊗ z_{k-j}
        # (row-major flattening: row p*d^{k-j} + q = x_j[p] * z_{k-j}[q],
        #  i.e. repeat-rows(x_j) * tile-rows(z_{k-j})).
        xk = xt[offs[k - 1]:offs[k - 1] + d ** k, :]
        acc = xk + z[k]
        for j in range(1, k):
            xj = xt[offs[j - 1]:offs[j - 1] + d ** j, :]
            zt = ty if j == k - 1 else jnp.tile(z[k - j], (d ** j, 1))
            acc = acc + jnp.repeat(xj, d ** (k - j), axis=0) * zt
        outs.append(acc)

    out = outs[0] if m == 1 else jnp.concatenate(outs, axis=0)   # (L, tb)
    o_ref[...] = out.T                                           # (tb, L)


def _vmem_limit_bytes():
    # Generation-aware: ~75% of physical VMEM (128 MiB v5e/v6e, 64 MiB v7x).
    try:
        phys = int(pltpu.get_tpu_info().vmem_capacity_bytes)
    except Exception:
        phys = 64 << 20                      # conservative fallback (v7x size)
    phys = min(phys, 128 << 20)
    return phys * 3 // 4


def _pick_tb(n, L, d, m, vmem_limit):
    """Batch tile: lane-aligned, vreg-pressure-capped, >=4 grid steps when
    possible (2 TensorCores on v7x × >=2 pipelined steps each)."""
    if n < 128:
        # Tiny batch: one small sublane-aligned tile.  Lanes are under-filled
        # after the in-kernel transpose — correct, just not fast (batch tiny).
        return -(-n // 8) * 8
    # Rough live f32 bytes per batch element in one grid step: double-buffered
    # x/out/y blocks + transposed copies + z levels + accumulators/temps.
    per_row = 4 * (7 * L + 3 * d + 3 * (d ** m))
    cap = (vmem_limit // 2) // max(per_row, 1)
    cap = min(cap, 512)                      # vreg / live-range pressure cap
    if cap < 128:
        return max(8, (cap // 8) * 8)        # very large L: small aligned tile
    cap = (cap // 128) * 128
    tb = max(128, min(cap, (-(-n // 128)) * 128))
    while tb > 128 and (-(-n // tb)) < 4:    # prefer >= 4 grid steps
        tb -= 128
    return tb


def sigjoin(x, y, m, fixed_last=None, *, tb=None):
    """Pallas-backed equivalent of SigJoinLayer(m, fixed_last)(x, y).

    x: (N, L) flattened signature (levels 1..m), y: (N, d) displacement
    (or (N, d-1) when fixed_last is given).  Returns float32 (N, L).
    """
    x = jnp.asarray(x, jnp.float32)
    y = jnp.asarray(y, jnp.float32)
    if fixed_last is not None:
        # iisignature semantics: the last displacement coordinate is fixed to
        # `fixed_last`; y supplies only the first d-1 coordinates.
        y = jnp.concatenate(
            [y, jnp.full((y.shape[0], 1), fixed_last, jnp.float32)], axis=-1)
    n, d = y.shape
    _, L = _level_offsets(d, m)
    assert x.shape == (n, L), (x.shape, (n, L))

    vmem_limit = _vmem_limit_bytes()
    if tb is None:
        tb = _pick_tb(n, L, d, m, vmem_limit)
    tb = max(8, int(tb))

    # Pad the batch up to a multiple of tb (keeps lane-dense tiles and
    # pipelining for any N); padded rows are discarded after the call.
    n_pad = pl.cdiv(n, tb) * tb
    if n_pad != n:
        x = jnp.pad(x, ((0, n_pad - n), (0, 0)))
        y = jnp.pad(y, ((0, n_pad - n), (0, 0)))

    kernel = functools.partial(_sigjoin_kernel, d=d, m=m)
    out = pl.pallas_call(
        kernel,
        out_shape=jax.ShapeDtypeStruct((n_pad, L), jnp.float32),
        grid_spec=pltpu.PrefetchScalarGridSpec(
            num_scalar_prefetch=0,
            grid=(n_pad // tb,),
            in_specs=[
                pl.BlockSpec((tb, L), lambda i: (i, 0)),
                pl.BlockSpec((tb, d), lambda i: (i, 0)),
            ],
            out_specs=pl.BlockSpec((tb, L), lambda i: (i, 0)),
        ),
        compiler_params=pltpu.CompilerParams(
            dimension_semantics=("parallel",),
            vmem_limit_bytes=vmem_limit),
    )(x, y)
    return out[:n] if n_pad != n else out


def _sigjoin_ref(x, y, m):
    """Plain-JAX reference (same Chen-identity math) for verification."""
    n, d = y.shape
    offs, _ = _level_offsets(d, m)
    z = [jnp.ones((n, 1), jnp.float32)]
    for k in range(1, m + 1):
        z.append((z[k - 1][:, :, None] * y[:, None, :]).reshape(n, d ** k) / k)
    xl = [jnp.ones((n, 1), jnp.float32)]
    for k in range(1, m + 1):
        xl.append(x[:, offs[k - 1]:offs[k - 1] + d ** k])
    outs = []
    for k in range(1, m + 1):
        acc = sum((xl[j][:, :, None] * z[k - j][:, None, :]).reshape(n, d ** k)
                  for j in range(k + 1))
        outs.append(acc)
    return jnp.concatenate(outs, axis=-1)


if __name__ == "__main__":
    key = jax.random.PRNGKey(0)
    k1, k2, k3, k4, k5, k6 = jax.random.split(key, 6)

    # --- small case: SigJoinLayer(m=3) on d=4 paths, batch 8 -------------
    m1, d1, n1 = 3, 4, 8
    L1 = sum(d1 ** k for k in range(1, m1 + 1))          # 4 + 16 + 64 = 84
    x1 = jax.random.normal(k1, (n1, L1), dtype=jnp.float32)
    y1 = jax.random.normal(k2, (n1, d1), dtype=jnp.float32)
    out1 = jax.block_until_ready(sigjoin(x1, y1, m1))
    ref1 = _sigjoin_ref(x1, y1, m1)
    assert out1.shape == (n1, L1) and out1.dtype == jnp.float32
    assert bool(jnp.allclose(out1, ref1, atol=1e-5, rtol=1e-5))

    # --- larger batch: 128-lane tiles, multiple grid steps, fixed_last ----
    m2, d2, n2, fixed_last = 4, 3, 256, 0.5
    L2 = sum(d2 ** k for k in range(1, m2 + 1))          # 3 + 9 + 27 + 81
    x2 = jax.random.normal(k3, (n2, L2), dtype=jnp.float32)
    y2 = jax.random.normal(k4, (n2, d2 - 1), dtype=jnp.float32)
    out2 = jax.block_until_ready(sigjoin(x2, y2, m2, fixed_last=fixed_last))
    y2_full = jnp.concatenate(
        [y2, jnp.full((n2, 1), fixed_last, jnp.float32)], axis=-1)
    ref2 = _sigjoin_ref(x2, y2_full, m2)
    assert out2.shape == (n2, L2) and out2.dtype == jnp.float32
    assert bool(jnp.allclose(out2, ref2, atol=1e-5, rtol=1e-5))

    # --- non-divisible batch: exercises the padded cdiv-grid path --------
    m3, d3, n3 = 3, 2, 200
    L3 = sum(d3 ** k for k in range(1, m3 + 1))          # 2 + 4 + 8 = 14
    x3 = jax.random.normal(k5, (n3, L3), dtype=jnp.float32)
    y3 = jax.random.normal(k6, (n3, d3), dtype=jnp.float32)
    out3 = jax.block_until_ready(sigjoin(x3, y3, m3))
    ref3 = _sigjoin_ref(x3, y3, m3)
    assert out3.shape == (n3, L3) and out3.dtype == jnp.float32
    assert bool(jnp.allclose(out3, ref3, atol=1e-5, rtol=1e-5))

    # TODO(synk): backward pass (iisignature.sigjoinbackprop) not implemented;
    # only the forward semantics of SigJoinLayer are reproduced here.
    print("KERNEL_OK")
</pallas_src>

<mosaic_0001>
module attributes {stable_mosaic.version = 11 : i64} {
  func.func @_sigjoin_kernel(%arg0: i32, %arg1: memref<8x84xf32, #tpu.memory_space<vmem>>, %arg2: memref<8x4xf32, #tpu.memory_space<vmem>>, %arg3: memref<8x84xf32, #tpu.memory_space<vmem>>) attributes {dimension_semantics = [#tpu.dimension_semantics<parallel>], iteration_bounds = array<i64: 1>, scalar_prefetch = 0 : i64, scratch_operands = 0 : i64, tpu.core_type = #tpu.core_type<tc>, window_params = [{transform_indices = @transform_0, window_bounds = array<i64: 8, 84>}, {transform_indices = @transform_1, window_bounds = array<i64: 8, 4>}, {transform_indices = @transform_2, window_bounds = array<i64: 8, 84>}]} {
    %c0 = arith.constant 0 : index
    %c0_0 = arith.constant 0 : index
    %0 = vector.load %arg1[%c0, %c0_0] : memref<8x84xf32, #tpu.memory_space<vmem>>, vector<8x84xf32>
    %1 = tpu.transpose %0, [1, 0] : vector<8x84xf32> -> vector<84x8xf32>
    %c0_1 = arith.constant 0 : index
    %c0_2 = arith.constant 0 : index
    %2 = vector.load %arg2[%c0_1, %c0_2] : memref<8x4xf32, #tpu.memory_space<vmem>>, vector<8x4xf32>
    %3 = tpu.transpose %2, [1, 0] : vector<8x4xf32> -> vector<4x8xf32>
    %4 = vector.extract_strided_slice %1 {offsets = [0, 0], sizes = [4, 8], strides = [1, 1]} : vector<84x8xf32> to vector<4x8xf32>
    %5 = arith.addf %4, %3 : vector<4x8xf32>
    %6 = tpu.concatenate %3, %3, %3, %3 in 0 : vector<4x8xf32>, vector<4x8xf32>, vector<4x8xf32>, vector<4x8xf32> -> vector<16x8xf32>
    %7 = vector.shape_cast %3 : vector<4x8xf32> to vector<4x1x8xf32>
    %8 = vector.broadcast %7 : vector<4x1x8xf32> to vector<4x4x8xf32>
    %9 = vector.shape_cast %8 : vector<4x4x8xf32> to vector<16x8xf32>
    %10 = arith.mulf %9, %6 : vector<16x8xf32>
    %cst = arith.constant 5.000000e-01 : f32
    %11 = vector.broadcast %cst : f32 to vector<16x8xf32>
    %12 = arith.mulf %10, %11 : vector<16x8xf32>
    %13 = vector.extract_strided_slice %1 {offsets = [4, 0], sizes = [16, 8], strides = [1, 1]} : vector<84x8xf32> to vector<16x8xf32>
    %14 = arith.addf %13, %12 : vector<16x8xf32>
    %15 = vector.extract_strided_slice %1 {offsets = [0, 0], sizes = [4, 8], strides = [1, 1]} : vector<84x8xf32> to vector<4x8xf32>
    %16 = vector.shape_cast %15 : vector<4x8xf32> to vector<4x1x8xf32>
    %17 = vector.broadcast %16 : vector<4x1x8xf32> to vector<4x4x8xf32>
    %18 = vector.shape_cast %17 : vector<4x4x8xf32> to vector<16x8xf32>
    %19 = arith.mulf %18, %6 : vector<16x8xf32>
    %20 = arith.addf %14, %19 : vector<16x8xf32>
    %21 = tpu.concatenate %3, %3, %3, %3, %3, %3, %3, %3, %3, %3, %3, %3, %3, %3, %3, %3 in 0 : vector<4x8xf32>, vector<4x8xf32>, vector<4x8xf32>, vector<4x8xf32>, vector<4x8xf32>, vector<4x8xf32>, vector<4x8xf32>, vector<4x8xf32>, vector<4x8xf32>, vector<4x8xf32>, vector<4x8xf32>, vector<4x8xf32>, vector<4x8xf32>, vector<4x8xf32>, vector<4x8xf32>, vector<4x8xf32> -> vector<64x8xf32>
    %22 = vector.shape_cast %12 : vector<16x8xf32> to vector<16x1x8xf32>
    %23 = vector.broadcast %22 : vector<16x1x8xf32> to vector<16x4x8xf32>
    %24 = vector.shape_cast %23 : vector<16x4x8xf32> to vector<64x8xf32>
    %25 = arith.mulf %24, %21 : vector<64x8xf32>
    %cst_3 = arith.constant 0.333333343 : f32
    %26 = vector.broadcast %cst_3 : f32 to vector<64x8xf32>
    %27 = arith.mulf %25, %26 : vector<64x8xf32>
    %28 = vector.extract_strided_slice %1 {offsets = [20, 0], sizes = [64, 8], strides = [1, 1]} : vector<84x8xf32> to vector<64x8xf32>
    %29 = arith.addf %28, %27 : vector<64x8xf32>
    %30 = vector.extract_strided_slice %1 {offsets = [0, 0], sizes = [4, 8], strides = [1, 1]} : vector<84x8xf32> to vector<4x8xf32>
    %31 = tpu.concatenate %12, %12, %12, %12 in 0 : vector<16x8xf32>, vector<16x8xf32>, vector<16x8xf32>, vector<16x8xf32> -> vector<64x8xf32>
    %32 = vector.shape_cast %30 : vector<4x8xf32> to vector<4x1x8xf32>
    %33 = vector.broadcast %32 : vector<4x1x8xf32> to vector<4x16x8xf32>
    %34 = vector.shape_cast %33 : vector<4x16x8xf32> to vector<64x8xf32>
    %35 = arith.mulf %34, %31 : vector<64x8xf32>
    %36 = arith.addf %29, %35 : vector<64x8xf32>
    %37 = vector.extract_strided_slice %1 {offsets = [4, 0], sizes = [16, 8], strides = [1, 1]} : vector<84x8xf32> to vector<16x8xf32>
    %38 = vector.shape_cast %37 : vector<16x8xf32> to vector<16x1x8xf32>
    %39 = vector.broadcast %38 : vector<16x1x8xf32> to vector<16x4x8xf32>
    %40 = vector.shape_cast %39 : vector<16x4x8xf32> to vector<64x8xf32>
    %41 = arith.mulf %40, %21 : vector<64x8xf32>
    %42 = arith.addf %36, %41 : vector<64x8xf32>
    %43 = tpu.concatenate %5, %20, %42 in 0 : vector<4x8xf32>, vector<16x8xf32>, vector<64x8xf32> -> vector<84x8xf32>
    %44 = tpu.transpose %43, [1, 0] : vector<84x8xf32> -> vector<8x84xf32>
    %c0_4 = arith.constant 0 : index
    %c0_5 = arith.constant 0 : index
    %45 = vector.load %arg3[%c0_4, %c0_5] : memref<8x84xf32, #tpu.memory_space<vmem>>, vector<8x84xf32>
    tpu.vector_store %arg3[%c0_4, %c0_5], %44 {strides = array<i32>} : memref<8x84xf32, #tpu.memory_space<vmem>>, vector<8x84xf32>,
    return
  }
  func.func @transform_0(%arg0: i32) -> (i32, i32) {
    %c0_i32 = arith.constant 0 : i32
    %c0_i32_0 = arith.constant 0 : i32
    return %arg0, %c0_i32 : i32, i32
  }
  func.func @transform_1(%arg0: i32) -> (i32, i32) {
    %c0_i32 = arith.constant 0 : i32
    %c0_i32_0 = arith.constant 0 : i32
    return %arg0, %c0_i32 : i32, i32
  }
  func.func @transform_2(%arg0: i32) -> (i32, i32) {
    %c0_i32 = arith.constant 0 : i32
    %c0_i32_0 = arith.constant 0 : i32
    return %arg0, %c0_i32 : i32, i32
  }
}

</mosaic_0001>

<bundles_post_ra>
// kernel: tpu_custom_call.1
= control target key start
LH: loop header
LB: loop body
LE: loop exit
PB: predicated region body
PF: predicated region fallthrough
CT: control target
= control target key end

     0   :  { %s1102_s0 = inlined_call_operand.vmem [shape: f32[8,84], index: 0, kind: input, shape index: {}]   ;;  %s1103_s1 = inlined_call_operand.vmem [shape: f32[8,4], index: 1, kind: input, shape index: {}]   ;;  %s1104_s2 = inlined_call_operand.hbm [shape: f32[8,84], index: 2, kind: output, shape index: {}]  }
   0x1   :  { %v45_v0 = vld [vmem:[%s1103_s1] sm:$0xff] }
   0x2   :  { %46 = vxpose.xlu0.b32.start.end [1/1] (short) (narrow) %v45_v0, 8 }
   0x3   :  { %7 = vsyncpa [#allocation3], 0  ;;  %v12_v1 = vld [vmem:[%s1102_s0] sm:$0xff]  ;;  %v823_v2 = vmov 1966171168   ;;  %v87_v4 = vlaneseq  ;;  %vm82_vm0 = vcmask 1043456  }
   0x4   :  { %v85_v3 = vunpack.c.l.s4 %v823_v2  ;;  %s824_s0 = smov [#allocation2]   ;;  %vm780_vm1 = vcmask 687104  }
   0x5   :  { %v88_v6 = vshrl.u32 %v87_v4, 7  ;;  %s788_s1 = sshll.u32 %s824_s0, 4  ;;  %s789_s1 = int_to_ptr.vmem [resolvable:$true] %s788_s1 }
   0x6   :  { %13 = vxpose.xlu0.b32.start.end [1/1] (short) (narrow) %v12_v1, 88  ;;  %v86_v5 = vunpack.c.0.s8 %v85_v3  ;;  %s799_s13 = scalar_lea.vmem %s789_s1, 128  ;;  %p804_p1 = scmp.lt.s32.totalorder %s789_s1, %s789_s1 }
   0x7   :  { %v848_v9 = vsub.s32 0, %v88_v6  ;;  %p800_p0 = scmp.ne.s32.totalorder %s789_s1, %s799_s13  ;;  %p805_p2 = scmp.lt.s32.totalorder %s799_s13, %s799_s13 }
   0x8   :  { %v846_v7 = vsub.s32 %v86_v5, %v88_v6 }
   0x9   :  { %p806_p3 = por %p805_p2, %p804_p1 }
   0xb   :  { %p807_p4 = pnand %p806_p3, %p800_p0 }
  0x82   :  { %v62_v8 = vpop.trf.xlu0 }
  0x83   :  { %v80_v10 = vrot.slane %v62_v8, 4  ;;  %v90_v11 = vrot.slane %v62_v8, %v846_v7 }
  0x85   :  { %v91_v12 = vcombine.high %v90_v11, %v90_v11  ;;  %v98_v13 = vrot.slane %v90_v11, %v846_v7  ;;  %v853_v14 = vsel %vm82_vm0, %v62_v8, %v80_v10 }
  0x86   :  { %v29_v15 = vpop.trf.xlu0  ;;  %v861_v21 = vcombine.high %v853_v14, %v853_v14 }
  0x87   :  { %v105_v16 = vrot.slane %v91_v12, %v846_v7  ;;  %v111_v17 = vrot.slane %v98_v13, %v848_v9  ;;  %v157_v18 = vrot.slane %v29_v15, %v846_v7  ;;  %v106_v19 = vcombine.high %v98_v13, %v98_v13 }
  0x88   :  { %v512_v28 = vcombine.high %v29_v15, %v29_v15  ;;  %v78_v38 = vadd.f32 %v62_v8, %v29_v15 }
  0x89   :  { %v115_v20 = vrot.slane %v105_v16, %v848_v9  ;;  %v131_v22 = vmul.f32 %v111_v17, %v853_v14  ;;  %v865_v23 = vrot.slane %v157_v18, %v846_v7  ;;  %v107_v24 = vcombine.high %v105_v16, %v105_v16 }
  0x8a   :  { %v119_v27 = vrot.slane %v106_v19, %v848_v9  ;;  %v158_v29 = vcombine.high %v157_v18, %v157_v18  ;;  %v30_v32 = vpop.trf.xlu0  ;;  %v875_v37 = vrot.slane %v512_v28, %v846_v7 }
  0x8b   :  { %v132_v25 = vmul.f32 %v861_v21, %v115_v20  ;;  %v135_v26 = vmul.f32 0.5, %v131_v22  ;;  %v178_v31 = vrot.slane %v865_v23, %v848_v9  ;;  %v123_v34 = vrot.slane %v107_v24, %v848_v9 }
  0x8c   :  { %v133_v36 = vmul.f32 %v119_v27, %v853_v14  ;;  %v878_v39 = vrot.slane %v158_v29, %v846_v7  ;;  %v537_v40 = vcombine.high %v30_v32, %v30_v32  ;;  %v544_v44 = vrot.slane %v30_v32, %v846_v7 }
  0x8d   :  { %v143_v30 = vcombine.low %v135_v26, %v135_v26  ;;  %v136_v33 = vmul.f32 0.5, %v132_v25  ;;  %v215_v35 = vrot.slane %v135_v26, %v846_v7  ;;  %v134_v41 = vmul.f32 %v861_v21, %v123_v34 }
  0x8e   :  { %v195_v46 = vmul.f32 %v178_v31, %v853_v14  ;;  %v173_v47 = vcombine.high %v865_v23, %v865_v23  ;;  %v520_v51 = vcombine.high %v875_v37, %v875_v37  ;;  %v137_v55 = vmul.f32 0.5, %v133_v36  ;;  %v31_v59 = vpop.trf.xlu0 }
  0x8f   :  { %v223_v42 = vrot.slane %v215_v35, %v846_v7  ;;  %v147_v43 = vadd.f32 %v143_v30, %v29_v15  ;;  %v216_v45 = vcombine.high %v215_v35, %v215_v35  ;;  %v886_v48 = vmul.f32 0.5, %v134_v41 }
  0x90   :  { %v889_v50 = vcombine.low %v135_v26, %v136_v33  ;;  %v202_v54 = vcombine.low %v195_v46, %v195_v46  ;;  %v896_v56 = vrot.slane %v875_v37, %v846_v7  ;;  %v899_v57 = vrot.slane %v537_v40, %v846_v7 }
  0x91   :  { %v308_v49 = vrot.slane %v223_v42, %v848_v9  ;;  %v230_v52 = vrot.slane %v216_v45, %v846_v7  ;;  %v231_v53 = vcombine.high %v223_v42, %v223_v42  ;;  %v552_v60 = vcombine.high %v544_v44, %v544_v44 }
  0x92   :  { %v206_v63 = vadd.f32 %v202_v54, %v147_v43  ;;  %v905_v0 = vrot.slane %v544_v44, %v846_v7  ;;  %v908_v1 = vcombine.low %v137_v55, %v886_v48  ;;  %v911_v2 = vmul.f32 %v889_v50, %v178_v31  ;;  %v32_v24 = vpop.trf.xlu0 }
  0x93   :  { %v385_v58 = vmul.f32 %v308_v49, %v853_v14  ;;  %v312_v61 = vrot.slane %v230_v52, %v848_v9  ;;  %v316_v62 = vrot.slane %v231_v53, %v848_v9  ;;  %v239_v3 = vrot.slane %v136_v33, %v846_v7 }
  0x94   :  { %v592_v4 = vrot.slane %v31_v59, %v846_v7  ;;  %v746_v8 = vsel %vm82_vm0, %v78_v38, %v206_v63  ;;  %v174_v10 = vcombine.high %v878_v39, %v878_v39  ;;  %v922_v11 = vrot.slane %v878_v39, %v848_v9 }
  0x95   :  { %v386_v5 = vmul.f32 %v312_v61, %v861_v21  ;;  %v387_v6 = vmul.f32 %v316_v62, %v853_v14  ;;  %v401_v12 = vmul.f32 0.33333334, %v385_v58  ;;  %748 = vxpose.xlu1.b32.start [1/11] (short) (narrow) %v746_v8, 8  ;;  %v232_v13 = vcombine.high %v230_v52, %v230_v52 }
  0x96   :  { %v553_v15 = vcombine.high %v899_v57, %v899_v57  ;;  %v928_v16 = vrot.slane %v899_v57, %v846_v7  ;;  %v247_v17 = vrot.slane %v239_v3, %v846_v7  ;;  %v144_v18 = vcombine.low %v136_v33, %v137_v55  ;;  %v33_v52 = vpop.trf.xlu0 }
  0x97   :  { %v932_v19 = vrot.slane %v552_v60, %v846_v7  ;;  %v582_v20 = vcombine.high %v905_v0, %v905_v0  ;;  %v477_v22 = vrot.slane %v911_v2, 4  ;;  %v462_v23 = vmul.f32 %v908_v1, %v178_v31 }
  0x98   :  { %v593_v25 = vcombine.high %v592_v4, %v592_v4  ;;  %v402_v26 = vmul.f32 0.33333334, %v386_v5  ;;  %v403_v27 = vmul.f32 0.33333334, %v387_v6  ;;  %v939_v28 = vrot.slane %v173_v47, %v848_v9 }
  0x99   :  { %v432_v29 = vcombine.low %v401_v12, %v401_v12  ;;  %v320_v30 = vrot.slane %v232_v13, %v848_v9  ;;  %v944_v33 = vmul.f32 %v889_v50, %v922_v11  ;;  %v196_v34 = vmul.f32 %v922_v11, %v861_v21 }
  0x9a   :  { %v148_v35 = vadd.f32 %v144_v18, %v30_v32  ;;  %v197_v31 = vmul.f32 %v939_v28, %v853_v14  ;;  %v240_v36 = vcombine.high %v239_v3, %v239_v3  ;;  %v255_v38 = vcombine.high %v247_v17, %v247_v17 }
  0x9b   :  { %v951_v39 = vrot.slane %v592_v4, %v846_v7  ;;  %v478_v40 = vrot.slane %v462_v23, 4  ;;  %v324_v41 = vrot.slane %v247_v17, %v848_v9  ;;  %v263_v42 = vrot.slane %v137_v55, %v846_v7 }
  0x9c   :  { %v149_v43 = vadd.f32 %v886_v48, %v31_v59  ;;  %v433_v44 = vcombine.low %v402_v26, %v403_v27  ;;  %v203_v45 = vcombine.low %v196_v34, %v197_v31  ;;  %v254_v46 = vrot.slane %v240_v36, %v846_v7  ;;  %v34_v26 = vpop.trf.xlu0 }
  0x9d   :  { %v448_v32 = vadd.f32 %v432_v29, %v31_v59  ;;  %v388_v47 = vmul.f32 %v320_v30, %v861_v21  ;;  %v480_v49 = vrot.slane %v944_v33, 4  ;;  %v271_v53 = vrot.slane %v263_v42, %v846_v7 }
  0x9e   :  { %v207_v54 = vadd.f32 %v203_v45, %v148_v35  ;;  %v328_v58 = vrot.slane %v254_v46, %v848_v9  ;;  %v332_v60 = vrot.slane %v255_v38, %v848_v9  ;;  %v256_v55 = vcombine.high %v254_v46, %v254_v46 }
  0x9f   :  { %v963_v61 = vrot.slane %v593_v25, %v846_v7  ;;  %v608_v62 = vcombine.high %v951_v39, %v951_v39  ;;  %v479_v59 = vsel %vm82_vm0, %v477_v22, %v478_v40  ;;  %v389_v63 = vmul.f32 %v324_v41, %v853_v14 }
  0xa0   :  { %v449_v2 = vadd.f32 %v433_v44, %v32_v24  ;;  %v481_v3 = vsel %vm82_vm0, %v478_v40, %v480_v49  ;;  %749 = vxpose.xlu1.b32.cont [2/11] (short) (narrow) %v207_v54, 8  ;;  %v336_v4 = vrot.slane %v256_v55, %v848_v9  ;;  %v974_v5 = vrot.slane %v174_v10, %v848_v9  ;;  %v35_v55 = vpop.trf.xlu0 }
  0xa1   :  { %v404_v6 = vmul.f32 0.33333334, %v388_v47  ;;  %v340_v8 = vrot.slane %v271_v53, %v848_v9  ;;  %v613_v12 = vrot.slane %v896_v56, %v848_v9  ;;  %v264_v13 = vcombine.high %v263_v42, %v263_v42 }
  0xa2   :  { %v501_v17 = vadd.f32 %v477_v22, %v448_v32  ;;  %v390_v18 = vmul.f32 %v328_v58, %v861_v21  ;;  %v391_v23 = vmul.f32 %v332_v60, %v853_v14  ;;  %v392_v24 = vmul.f32 %v336_v4, %v861_v21 }
  0xa3   :  { %v405_v25 = vmul.f32 0.33333334, %v389_v63  ;;  %v198_v10 = vmul.f32 %v974_v5, %v861_v21  ;;  %v690_v27 = vmul.f32 %v613_v12, %v853_v14  ;;  %v279_v29 = vcombine.high %v271_v53, %v271_v53 }
  0xa4   :  { %v502_v30 = vadd.f32 %v479_v59, %v449_v2  ;;  %v464_v34 = vmul.f32 %v908_v1, %v922_v11  ;;  %v989_v22 = vmul.f32 %v889_v50, %v939_v28  ;;  %v278_v35 = vrot.slane %v264_v13, %v846_v7 }
  0xa5   :  { %v434_v31 = vcombine.low %v404_v6, %v405_v25  ;;  %v393_v36 = vmul.f32 %v340_v8, %v853_v14  ;;  %v721_v38 = vcombine.low %v690_v27, %v690_v27  ;;  %v534_v40 = vrot.slane %v520_v51, %v846_v7 }
  0xa6   :  { %v406_v41 = vmul.f32 0.33333334, %v390_v18  ;;  %v407_v42 = vmul.f32 0.33333334, %v391_v23  ;;  %v408_v44 = vmul.f32 0.33333334, %v392_v24  ;;  %v535_v11 = vcombine.high %v896_v56, %v896_v56 }
  0xa7   :  { %v208_v45 = vadd.f32 %v198_v10, %v149_v43  ;;  %v737_v46 = vadd.f32 %v721_v38, %v501_v17  ;;  %v348_v32 = vrot.slane %v279_v29, %v848_v9  ;;  %v617_v47 = vrot.slane %v534_v40, %v848_v9 }
  0xa8   :  { %v482_v53 = vrot.slane %v464_v34, 4  ;;  %v484_v54 = vrot.slane %v989_v22, 4  ;;  %v344_v58 = vrot.slane %v278_v35, %v848_v9  ;;  %v621_v37 = vrot.slane %v535_v11, %v848_v9 }
  0xa9   :  { %v450_v51 = vadd.f32 %v434_v31, %v33_v52  ;;  %v409_v60 = vmul.f32 0.33333334, %v393_v36  ;;  %v747_v59 = vsel %vm82_vm0, %v208_v45, %v737_v46  ;;  %v691_v56 = vmul.f32 %v617_v47, %v861_v21  ;;  %v36_v31 = vpop.trf.xlu0 }
  0xaa   :  { %v435_v43 = vcombine.low %v406_v41, %v407_v42  ;;  %750 = vxpose.xlu1.b32.cont [3/11] (short) (narrow) %v747_v59, 8  ;;  %v692_v63 = vmul.f32 %v621_v37, %v853_v14  ;;  %v280_v2 = vcombine.high %v278_v35, %v278_v35  ;;  %v287_v4 = vrot.slane %v886_v48, %v846_v7 }
  0xab   :  { %v436_v6 = vcombine.low %v408_v44, %v409_v60  ;;  %v395_v8 = vmul.f32 %v348_v32, %v853_v14  ;;  %v536_v12 = vcombine.high %v534_v40, %v534_v40  ;;  %v629_v52 = vrot.slane %v905_v0, %v848_v9 }
  0xac   :  { %v394_v13 = vmul.f32 %v344_v58, %v861_v21  ;;  %v722_v17 = vcombine.low %v691_v56, %v692_v63  ;;  %v295_v18 = vrot.slane %v287_v4, %v846_v7  ;;  %v288_v23 = vcombine.high %v287_v4, %v287_v4 }
  0xad   :  { %v503_v24 = vadd.f32 %v481_v3, %v450_v51  ;;  %v483_v25 = vsel %vm82_vm0, %v480_v49, %v482_v53  ;;  %v1019_v48 = vmul.f32 %v908_v1, %v939_v28  ;;  %v625_v10 = vrot.slane %v536_v12, %v848_v9  ;;  %v37_v59 = vpop.trf.xlu0 }
  0xae   :  { %v451_v27 = vadd.f32 %v435_v43, %v34_v26  ;;  %v738_v29 = vadd.f32 %v722_v17, %v502_v30  ;;  %v352_v34 = vrot.slane %v280_v2, %v848_v9  ;;  %v302_v35 = vrot.slane %v288_v23, %v846_v7 }
  0xaf   :  { %v356_v36 = vrot.slane %v295_v18, %v848_v9  ;;  %v693_v3 = vmul.f32 %v625_v10, %v861_v21  ;;  %v694_v33 = vmul.f32 %v629_v52, %v853_v14  ;;  %v303_v49 = vcombine.high %v295_v18, %v295_v18 }
  0xb0   :  { %v452_v38 = vadd.f32 %v436_v6, %v35_v55  ;;  %v410_v40 = vmul.f32 0.33333334, %v394_v13  ;;  %v411_v28 = vmul.f32 0.33333334, %v395_v8  ;;  %751 = vxpose.xlu1.b32.cont [4/11] (short) (narrow) %v738_v29, 8  ;;  %v633_v26 = vrot.slane %v932_v19, %v848_v9 }
  0xb1   :  { %v723_v30 = vcombine.low %v693_v3, %v694_v33  ;;  %v360_v41 = vrot.slane %v302_v35, %v848_v9  ;;  %v364_v42 = vrot.slane %v303_v49, %v848_v9  ;;  %v637_v44 = vrot.slane %v582_v20, %v848_v9 }
  0xb2   :  { %v485_v11 = vsel %vm82_vm0, %v482_v53, %v484_v54  ;;  %v486_v45 = vrot.slane %v1019_v48, 4  ;;  %v396_v46 = vmul.f32 %v352_v34, %v861_v21  ;;  %v695_v32 = vmul.f32 %v633_v26, %v861_v21  ;;  %v38_v34 = vpop.trf.xlu0 }
  0xb3   :  { %v504_v47 = vadd.f32 %v483_v25, %v451_v27  ;;  %v397_v58 = vmul.f32 %v356_v36, %v853_v14  ;;  %v739_v37 = vadd.f32 %v723_v30, %v503_v24  ;;  %v696_v51 = vmul.f32 %v637_v44, %v853_v14 }
  0xb4   :  { %v505_v60 = vadd.f32 %v485_v11, %v452_v38  ;;  %v437_v55 = vcombine.low %v410_v40, %v411_v28  ;;  %v304_v0 = vcombine.high %v302_v35, %v302_v35  ;;  %v584_v20 = vcombine.high %v932_v19, %v932_v19 }
  0xb5   :  { %752 = vxpose.xlu1.b32.cont [5/11] (short) (narrow) %v739_v37, 8  ;;  %v398_v53 = vmul.f32 %v360_v41, %v861_v21  ;;  %v399_v56 = vmul.f32 %v364_v42, %v853_v14  ;;  %v724_v43 = vcombine.low %v695_v32, %v696_v51  ;;  %v645_v63 = vrot.slane %v928_v16, %v848_v9 }
  0xb6   :  { %v412_v2 = vmul.f32 0.33333334, %v396_v46  ;;  %v641_v4 = vrot.slane %v584_v20, %v848_v9  ;;  %v581_v6 = vrot.slane %v553_v15, %v846_v7  ;;  %v583_v19 = vcombine.high %v928_v16, %v928_v16  ;;  %v39_v46 = vpop.trf.xlu0 }
  0xb7   :  { %v453_v8 = vadd.f32 %v437_v55, %v36_v31  ;;  %v413_v12 = vmul.f32 0.33333334, %v397_v58  ;;  %v467_v52 = vmul.f32 %v889_v50, %v974_v5  ;;  %v740_v13 = vadd.f32 %v724_v43, %v504_v47 }
  0xb8   :  { %v697_v17 = vmul.f32 %v641_v4, %v861_v21  ;;  %v698_v18 = vmul.f32 %v645_v63, %v853_v14  ;;  %v649_v23 = vrot.slane %v581_v6, %v848_v9  ;;  %v653_v24 = vrot.slane %v583_v19, %v848_v9 }
  0xb9   :  { %v414_v25 = vmul.f32 0.33333334, %v398_v53  ;;  %v415_v57 = vmul.f32 0.33333334, %v399_v56  ;;  %753 = vxpose.xlu1.b32.cont [6/11] (short) (narrow) %v740_v13, 8  ;;  %v368_v7 = vrot.slane %v304_v0, %v848_v9  ;;  %v585_v15 = vcombine.high %v581_v6, %v581_v6 }
  0xba   :  { %v438_v16 = vcombine.low %v412_v2, %v413_v12  ;;  %v725_v48 = vcombine.low %v697_v17, %v698_v18  ;;  %v699_v10 = vmul.f32 %v649_v23, %v861_v21  ;;  %v700_v50 = vmul.f32 %v653_v24, %v853_v14 }
  0xbb   :  { %v487_v27 = vsel %vm82_vm0, %v484_v54, %v486_v45  ;;  %v468_v29 = vmul.f32 %v908_v1, %v974_v5  ;;  %v657_v35 = vrot.slane %v585_v15, %v848_v9  ;;  %v661_v33 = vrot.slane %v951_v39, %v848_v9 }
  0xbc   :  { %v506_v31 = vadd.f32 %v487_v27, %v453_v8  ;;  %v454_v36 = vadd.f32 %v438_v16, %v37_v59  ;;  %v741_v3 = vadd.f32 %v725_v48, %v505_v60  ;;  %v488_v49 = vrot.slane %v467_v52, 4 }
  0xbd   :  { %v439_v38 = vcombine.low %v414_v25, %v415_v57  ;;  %v400_v40 = vmul.f32 %v368_v7, %v861_v21  ;;  %v726_v22 = vcombine.low %v699_v10, %v700_v50  ;;  %v701_v54 = vmul.f32 %v657_v35, %v861_v21 }
  0xbe   :  { %754 = vxpose.xlu1.b32.cont [7/11] (short) (narrow) %v741_v3, 8  ;;  %v665_v1 = vrot.slane %v963_v61, %v848_v9  ;;  %v669_v5 = vrot.slane %v608_v62, %v848_v9  ;;  %v489_v28 = vsel %vm82_vm0, %v486_v45, %v488_v49  ;;  %v490_v26 = vrot.slane %v468_v29, 4 }
  0xbf   :  { %v507_v30 = vadd.f32 %v489_v28, %v454_v36  ;;  %v455_v41 = vadd.f32 %v439_v38, %v38_v34  ;;  %v742_v42 = vadd.f32 %v726_v22, %v506_v31  ;;  %v702_v44 = vmul.f32 %v661_v33, %v853_v14 }
  0xc0   :  { %v416_v11 = vmul.f32 0.33333334, %v400_v40  ;;  %v703_v47 = vmul.f32 %v665_v1, %v861_v21  ;;  %v704_v58 = vmul.f32 %v669_v5, %v853_v14  ;;  %v609_v39 = vcombine.high %v963_v61, %v963_v61 }
  0xc1   :  { %v727_v32 = vcombine.low %v701_v54, %v702_v44  ;;  %v491_v62 = vsel %vm82_vm0, %v488_v49, %v490_v26 }
  0xc2   :  { %755 = vxpose.xlu1.b32.cont [8/11] (short) (narrow) %v742_v42, 8  ;;  %v508_v45 = vadd.f32 %v491_v62, %v455_v41  ;;  %v456_v37 = vadd.f32 %v416_v11, %v39_v46  ;;  %v728_v60 = vcombine.low %v703_v47, %v704_v58  ;;  %v673_v55 = vrot.slane %v609_v39, %v848_v9 }
  0xc3   :  { %v743_v51 = vadd.f32 %v727_v32, %v507_v30 }
  0xc4   :  { %v509_v0 = vadd.f32 %v490_v26, %v456_v37  ;;  %v744_v20 = vadd.f32 %v728_v60, %v508_v45  ;;  %v705_v59 = vmul.f32 %v673_v55, %v861_v21 }
  0xc6   :  { %756 = vxpose.xlu1.b32.cont [9/11] (short) (narrow) %v743_v51, 8  ;;  %v745_v53 = vadd.f32 %v705_v59, %v509_v0 }
  0xca   :  { %757 = vxpose.xlu1.b32.cont [10/11] (short) (narrow) %v744_v20, 8 }
  0xce   :  { %758 = vxpose.xlu1.b32.end [11/11] (short) (narrow) %v745_v53, 8 }
 0x126   :  { %v764_v14 = vpop.trf.xlu1 }
 0x127   :  { %781 = vst.msk [vmem:[#allocation2] sm:$0xff] %vm780_vm1, %v764_v14 }
 0x128   :  { %810 = shalt.err (!%p807_p4)
}
 0x129   :  { %s811_s16 = scalar_lea.hbm %s1104_s2, 128 }
 0x12a   :  { %p812_p5 = scmp.ne.s32.totalorder %s1104_s2, %s811_s16  ;;  %p815_p6 = scmp.lt.u32.totalorder %s811_s16, %s1104_s2 }
 0x12c   :  { %p817_p7 = pnand %p815_p6, %p812_p5 }
 0x12e   :  { %820 = shalt.err (!%p817_p7)
}
 0x12f   :  { %791 = dma.vmem_to_hbm [thread:$0]  %s789_s1, 128, %s1104_s2, [#allocation3]  }
 0x130   :  { %821 = dma.done.wait [#allocation3], 128  }
 0x131   :  { %822 = vsyncadd [#allocation3], 4294967168 }
 0x132   :  { %795 = vsyncpa [#allocation3], 1 }

</bundles_post_ra>
